<compile_context>
chip_gen: v5e
topology: v5e:2x2
jax: 0.10.0
libtpu: 0.0.40
codegen_flags: <defaults>
</compile_context>

<pallas_src>
import jax
import jax.numpy as jnp
from jax.experimental import pallas as pl
from jax.experimental.pallas import tpu as pltpu


def _bmm_t_kernel(x_ref, y_ref, o_ref, acc_ref):
    """Tile body: acc(tn,tm) += y(tk,tn)^T-contracted-with-x(tm,tk) on the MXU."""
    k = pl.program_id(3)

    @pl.when(k == 0)
    def _():
        acc_ref[...] = jnp.zeros_like(acc_ref)

    # Contract y's K (dim 0) with x's K (dim 1) -> (tn, tm) result directly;
    # the transpose is free (operand feed), accumulator layout == output layout.
    acc_ref[...] += jax.lax.dot_general(
        y_ref[...], x_ref[...],
        dimension_numbers=(((0,), (1,)), ((), ())),
        preferred_element_type=jnp.float32,
    )

    @pl.when(k == pl.num_programs(3) - 1)
    def _():
        o_ref[...] = acc_ref[...].astype(o_ref.dtype)


def _pick_tile(dim, candidates):
    """Largest preferred tile that divides dim; fall back to full extent."""
    for c in candidates:
        if dim >= c and dim % c == 0:
            return c
    return dim  # full-extent block is always legal


def out_transfree_bf16_bmm(x1, y1):
    """Pallas equivalent of torch.matmul(x1, y1).permute(0, 1, 3, 2)."""
    assert x1.ndim == 4 and y1.ndim == 4, "expected 4-D (B, H, M, K) and (B, H, K, N)"
    B, H, M, K = x1.shape
    B2, H2, K2, N = y1.shape
    assert (B, H) == (B2, H2) and K == K2, "incompatible bmm shapes"

    out_dtype = jnp.result_type(x1.dtype, y1.dtype)

    # Collapse batch dims into one parallel grid axis.
    BH = B * H
    x = x1.reshape(BH, M, K)
    y = y1.reshape(BH, K, N)

    # 256-aligned tiles preferred (fills the 256x256 MXUs on v6e/v7x),
    # 128-aligned otherwise, full dim for small shapes.
    tm = _pick_tile(M, (256, 128))
    tn = _pick_tile(N, (256, 128))
    tk = _pick_tile(K, (512, 256, 128))

    grid = (BH, N // tn, M // tm, K // tk)

    in_bytes = jnp.dtype(x1.dtype).itemsize
    out_bytes = jnp.dtype(out_dtype).itemsize
    # Double-buffered input tiles + double-buffered output tile + f32 accumulator.
    vmem_need = (2 * (tm * tk + tk * tn) * in_bytes
                 + 2 * tn * tm * out_bytes
                 + tn * tm * 4)
    vmem_limit = int(min(max(4 * vmem_need, 16 * 1024 * 1024), 48 * 1024 * 1024))

    cost = pl.CostEstimate(
        flops=2 * BH * M * N * K,
        bytes_accessed=int(x.size * in_bytes + y.size * in_bytes
                           + BH * N * M * out_bytes),
        transcendentals=0,
    )

    out = pl.pallas_call(
        _bmm_t_kernel,
        out_shape=jax.ShapeDtypeStruct((BH, N, M), out_dtype),
        grid_spec=pltpu.PrefetchScalarGridSpec(
            num_scalar_prefetch=0,
            grid=grid,
            in_specs=[
                # Leading batch dim squeezed (None) -> kernel sees 2-D tiles.
                pl.BlockSpec((None, tm, tk), lambda b, n, m, k: (b, m, k)),
                pl.BlockSpec((None, tk, tn), lambda b, n, m, k: (b, k, n)),
            ],
            out_specs=pl.BlockSpec((None, tn, tm), lambda b, n, m, k: (b, n, m)),
            scratch_shapes=[pltpu.VMEM((tn, tm), jnp.float32)],
        ),
        compiler_params=pltpu.CompilerParams(
            dimension_semantics=("parallel", "parallel", "parallel", "arbitrary"),
            vmem_limit_bytes=vmem_limit,
        ),
        cost_estimate=cost,
    )(x, y)

    return out.reshape(B, H, N, M)


if __name__ == "__main__":
    key = jax.random.PRNGKey(0)
    k1, k2 = jax.random.split(key)

    # Small but lane-dense shapes: (B, H, M, K) x (B, H, K, N), bf16 as the
    # module name implies.
    B, H, M, K, N = 2, 2, 128, 128, 128
    x1 = jax.random.normal(k1, (B, H, M, K), dtype=jnp.float32).astype(jnp.bfloat16)
    y1 = jax.random.normal(k2, (B, H, K, N), dtype=jnp.float32).astype(jnp.bfloat16)

    out = out_transfree_bf16_bmm(x1, y1)
    out = jax.block_until_ready(out)

    # Reference: f32-accumulated matmul of the (bf16-rounded) inputs, permuted.
    ref = jnp.einsum(
        "bhmk,bhkn->bhnm",
        x1.astype(jnp.float32), y1.astype(jnp.float32),
        precision=jax.lax.Precision.HIGHEST,
    )
    assert out.shape == (B, H, N, M), out.shape
    assert out.dtype == jnp.bfloat16, out.dtype
    assert jnp.allclose(out.astype(jnp.float32), ref, atol=2e-2, rtol=2e-2), \
        "mismatch vs reference"

    print("KERNEL_OK")
</pallas_src>

<mosaic_0001>
module attributes {stable_mosaic.version = 11 : i64} {
  func.func @_bmm_t_kernel(%arg0: i32, %arg1: i32, %arg2: i32, %arg3: i32, %arg4: memref<1x128x128xbf16, #tpu.memory_space<vmem>>, %arg5: memref<1x128x128xbf16, #tpu.memory_space<vmem>>, %arg6: memref<1x128x128xbf16, #tpu.memory_space<vmem>>, %arg7: memref<128x128xf32, #tpu.memory_space<vmem>>) attributes {dimension_semantics = [#tpu.dimension_semantics<parallel>, #tpu.dimension_semantics<parallel>, #tpu.dimension_semantics<parallel>, #tpu.dimension_semantics<arbitrary>], iteration_bounds = array<i64: 4, 1, 1, 1>, scalar_prefetch = 0 : i64, scratch_operands = 1 : i64, tpu.core_type = #tpu.core_type<tc>, window_params = [{transform_indices = @transform_0, window_bounds = array<i64: 1, 128, 128>}, {transform_indices = @transform_1, window_bounds = array<i64: 1, 128, 128>}, {transform_indices = @transform_2, window_bounds = array<i64: 1, 128, 128>}]} {
    %c0_i32 = arith.constant 0 : i32
    %0 = arith.cmpi eq, %arg3, %c0_i32 : i32
    %1 = arith.extui %0 : i1 to i32
    %c0_i32_0 = arith.constant 0 : i32
    %2 = arith.cmpi ne, %1, %c0_i32_0 : i32
    scf.if %2 {
      %cst_12 = arith.constant 0.000000e+00 : f32
      %14 = vector.broadcast %cst_12 : f32 to vector<128x128xf32>
      %c0_13 = arith.constant 0 : index
      %c0_14 = arith.constant 0 : index
      %15 = vector.load %arg7[%c0_13, %c0_14] : memref<128x128xf32, #tpu.memory_space<vmem>>, vector<128x128xf32>
      tpu.vector_store %arg7[%c0_13, %c0_14], %14 {strides = array<i32>} : memref<128x128xf32, #tpu.memory_space<vmem>>, vector<128x128xf32>,
    } else {
    }
    %c0 = arith.constant 0 : index
    %c0_1 = arith.constant 0 : index
    %3 = vector.load %arg7[%c0, %c0_1] : memref<128x128xf32, #tpu.memory_space<vmem>>, vector<128x128xf32>
    %c0_2 = arith.constant 0 : index
    %c0_3 = arith.constant 0 : index
    %c0_4 = arith.constant 0 : index
    %4 = vector.load %arg5[%c0_2, %c0_3, %c0_4] : memref<1x128x128xbf16, #tpu.memory_space<vmem>>, vector<1x128x128xbf16>
    %5 = vector.shape_cast %4 : vector<1x128x128xbf16> to vector<128x128xbf16>
    %c0_5 = arith.constant 0 : index
    %c0_6 = arith.constant 0 : index
    %c0_7 = arith.constant 0 : index
    %6 = vector.load %arg4[%c0_5, %c0_6, %c0_7] : memref<1x128x128xbf16, #tpu.memory_space<vmem>>, vector<1x128x128xbf16>
    %7 = vector.shape_cast %6 : vector<1x128x128xbf16> to vector<128x128xbf16>
    %cst = arith.constant dense<0.000000e+00> : vector<128x128xf32>
    %8 = tpu.matmul %5, %7, %cst {dimension_numbers = #tpu.dot_dimension_numbers<[0], [1], [1], [0], [0, 1, 1, 0], [], []>} : vector<128x128xbf16>, vector<128x128xbf16>, vector<128x128xf32> -> vector<128x128xf32>
    %9 = arith.addf %3, %8 : vector<128x128xf32>
    %c0_8 = arith.constant 0 : index
    %c0_9 = arith.constant 0 : index
    %10 = vector.load %arg7[%c0_8, %c0_9] : memref<128x128xf32, #tpu.memory_space<vmem>>, vector<128x128xf32>
    tpu.vector_store %arg7[%c0_8, %c0_9], %9 {strides = array<i32>} : memref<128x128xf32, #tpu.memory_space<vmem>>, vector<128x128xf32>,
    %c0_i32_10 = arith.constant 0 : i32
    %11 = arith.cmpi eq, %arg3, %c0_i32_10 : i32
    %12 = arith.extui %11 : i1 to i32
    %c0_i32_11 = arith.constant 0 : i32
    %13 = arith.cmpi ne, %12, %c0_i32_11 : i32
    scf.if %13 {
      %c0_12 = arith.constant 0 : index
      %c0_13 = arith.constant 0 : index
      %14 = vector.load %arg7[%c0_12, %c0_13] : memref<128x128xf32, #tpu.memory_space<vmem>>, vector<128x128xf32>
      %15 = arith.truncf %14 : vector<128x128xf32> to vector<128x128xbf16>
      %c0_14 = arith.constant 0 : index
      %c0_15 = arith.constant 0 : index
      %c0_16 = arith.constant 0 : index
      %16 = vector.load %arg6[%c0_14, %c0_15, %c0_16] : memref<1x128x128xbf16, #tpu.memory_space<vmem>>, vector<1x128x128xbf16>
      %17 = vector.shape_cast %16 : vector<1x128x128xbf16> to vector<128x128xbf16>
      %18 = vector.shape_cast %15 : vector<128x128xbf16> to vector<1x128x128xbf16>
      tpu.vector_store %arg6[%c0_14, %c0_15, %c0_16], %18 {strides = array<i32>} : memref<1x128x128xbf16, #tpu.memory_space<vmem>>, vector<1x128x128xbf16>,
    } else {
    }
    return
  }
  func.func @transform_0(%arg0: i32, %arg1: i32, %arg2: i32, %arg3: i32) -> (i32, i32, i32) {
    %c0_i32 = arith.constant 0 : i32
    return %arg0, %arg2, %arg3 : i32, i32, i32
  }
  func.func @transform_1(%arg0: i32, %arg1: i32, %arg2: i32, %arg3: i32) -> (i32, i32, i32) {
    %c0_i32 = arith.constant 0 : i32
    return %arg0, %arg3, %arg1 : i32, i32, i32
  }
  func.func @transform_2(%arg0: i32, %arg1: i32, %arg2: i32, %arg3: i32) -> (i32, i32, i32) {
    %c0_i32 = arith.constant 0 : i32
    return %arg0, %arg1, %arg2 : i32, i32, i32
  }
}

</mosaic_0001>

<bundles_post_ra>
// kernel: tpu_custom_call.1
= control target key start
LH: loop header
LB: loop body
LE: loop exit
PB: predicated region body
PF: predicated region fallthrough
CT: control target
= control target key end

     0   :  { %7 = vsyncpa [#allocation4], 0  ;;  %s1292_s0 = inlined_call_operand.hbm [shape: bf16[4,128,128], index: 0, kind: input, shape index: {}]   ;;  %s1293_s1 = inlined_call_operand.hbm [shape: bf16[4,128,128], index: 1, kind: input, shape index: {}]   ;;  %s1294_s2 = inlined_call_operand.hbm [shape: bf16[4,128,128], index: 2, kind: output, shape index: {}]  }
   0x1   :  { %9 = vsyncpa [#allocation4 + $0x1], 0 }
   0x2   :  { %10 = vsyncpa [#allocation7], 0 }
   0x3   :  { %12 = vsyncpa [#allocation7 + $0x1], 0 }
   0x4   :  { %13 = vsyncpa [#allocation5], 0 }
   0x5   :  { %15 = vsyncpa [#allocation5 + $0x1], 0  ;;  %s1117_s9 = smov 0   ;;  %s1119_s10 = smov 0  }
   0x6   :  { %s1121_s11 = smov 0   ;;  %s1123_s12 = smov 0  }
   0x7   :  { %s1125_s13 = smov 0   ;;  %s1127_s14 = smov 0  }
   0x8 LB: > { %s706_s15 = sadd.s32 4294967295, %s1096_s14   ;;  %s707_s16 = sadd.s32 4294967294, %s1096_s14   ;;  %s1096_s14 = sphi %s1127_s14, %s21_s14   ;;  %s1092_s13 = sphi %s1125_s13, %s1304_s13   ;;  %s1088_s12 = sphi %s1123_s12, %s1303_s12   ;;  %s1084_s11 = sphi %s1121_s11, %s1302_s11   ;;  %s1080_s10 = sphi %s1119_s10, %s1301_s10   ;;  %s1076_s9 = sphi %s1117_s9, %s1300_s9  }
   0x9   : > { %s47_s17 = sadd.s32 1, %s1092_s13  ;;  %s58_s18 = sadd.s32 1, %s1084_s11 }
   0xa   : > { %p49_p0 = scmp.ge.s32.totalorder %s47_s17, 4  ;;  %p65_p1 = scmp.ne.s32.totalorder %s1084_s11, %s1080_s10 }
   0xb   : > { %p66_p2 = scmp.eq.s32.totalorder %s1096_s14, 0  ;;  %p71_p3 = scmp.ne.s32.totalorder %s1080_s10, %s1076_s9 }
   0xc   : > { %s1306_s17 = smov (%p49_p0, %s47_s17), 0  ;;  %p72_p5 = scmp.eq.s32.totalorder %s706_s15, 0 }
   0xd   : > { %p1158_p4 = por %p66_p2, %p65_p1  ;;  %s51_s20 = ssub.s32 %s1092_s13, %s1306_s17 }
   0xe   : > { %p129_p6 = scmp.eq.s32.totalorder %s706_s15, 3  ;;  %p56_p7 = scmp.eq.s32.totalorder %s51_s20, 0 }
   0xf   : > { %p1164_p8 = por %p72_p5, %p71_p3  ;;  %p135_p10 = scmp.eq.s32.totalorder %s707_s16, 3 }
  0x10   : > { %p1168_p9 = por %p129_p6, %p65_p1  ;;  %p896_p12 = scmp.lt.s32.totalorder %s1096_s14, 4 }
  0x11   : > { %s1173_s23 = scalar_select %p56_p7, %s1084_s11, %s58_s18  }
  0x12   : > { %p1175_p11 = por %p135_p10, %p71_p3  ;;  %s1181_s25 = sand.u32 1, %s1084_s11  }
  0x13   : > { %s710_s26 = sshll.u32 %s1181_s25, 6  ;;  %s789_s27 = sshll.u32 %s1092_s13, 6 }
  0x14   : > { %s167_s30 = scalar_lea.hbm %s1292_s0, %s789_s27  ;;  %s159_s3 = scalar_lea.vmem [#allocation3], %s710_s26 }
  0x15   : > { %s170_s4 = sshll.u32 %s159_s3, 4  ;;  %s168_s5 = sshll.u32 %s167_s30, 4  ;;  %s171_s4 = int_to_ptr.vmem [resolvable:$true] %s170_s4  ;;  %s169_s5 = int_to_ptr.hbm [resolvable:$true] %s168_s5 }
  0x16   : > { %p1190_p13 = pnand %p896_p12, %p1158_p4  ;;  %p716_p0 = scmp.ge.s32.totalorder %s1096_s14, 1 }
  0x17   : > { %s156_s7 = scalar_lea.sflag [#allocation4], %s1181_s25  ;;  %s1098_s8 = smov 64  }
  0x18   : > { %s1099_s15 = smov 4   ;;  %p203_p1 = scmp.lt.s32.totalorder %s1096_s14, 5 }
  0x19   : > { %888 = dma.hbm_to_vmem [thread:$0]  (!%p1190_p13), %s169_s5, 1024, %s171_s4, %s156_s7, %s1098_s8, %s1098_s8, %s1099_s15  }
  0x1a   : > { %s192_s20 = scalar_lea.hbm %s1293_s1, %s789_s27  ;;  %p204_p2 = pnand %p716_p0, %p203_p1 }
  0x1b   : > { %s193_s28 = sshll.u32 %s192_s20, 4  ;;  %s184_s19 = scalar_lea.vmem [#allocation6], %s710_s26  ;;  %s194_s28 = int_to_ptr.hbm [resolvable:$true] %s193_s28 }
  0x1c   : > { %s195_s29 = sshll.u32 %s184_s19, 4  ;;  %s181_s30 = scalar_lea.sflag [#allocation7], %s1181_s25  ;;  %s196_s29 = int_to_ptr.vmem [resolvable:$true] %s195_s29 }
  0x1d   : > { %891 = dma.hbm_to_vmem [thread:$0]  (!%p1190_p13), %s194_s28, 1024, %s196_s29, %s181_s30, %s1098_s8, %s1098_s8, %s1099_s15  }
  0x1e   : > { %207 = sbr.rel (%p204_p2) target bundleno = 470 (0x1d6), region = 28  ;;  %s1206_s3 = sand.u32 (!%p204_p2), 1, %s1080_s10  }
  0x1f   : > { %s1209_s4 = sshll.u32 (!%p204_p2), %s1206_s3, 6  ;;  %s210_s27 = scalar_lea.sflag (!%p204_p2), [#allocation4], %s1206_s3 }
  0x20   : > { %s1213_s5 = scalar_lea.vmem (!%p204_p2), [#allocation3], %s1209_s4 }
  0x23   : > { %1063 = dma.done.wait (%p1164_p8), %s210_s27, 1024  }
  0x24   : > { %1065 = vsyncadd (%p1164_p8), %s210_s27, 4294966272  ;;  %s220_s25 = scalar_lea.sflag [#allocation7], %s1206_s3  ;;  %s1221_s26 = scalar_lea.vmem [#allocation6], %s1209_s4 }
  0x25   : > { %1067 = dma.done.wait (%p1164_p8), %s220_s25, 1024  }
  0x26   : > { %1069 = vsyncadd (%p1164_p8), %s220_s25, 4294966272  ;;  %v791_v0 = vld [vmem:[%s1221_s26] sm:$0xff]  ;;  %v792_v1 = vld [vmem:[%s1221_s26 + $0x8] sm:$0xff]  ;;  %s1244_s21 = scalar_lea.vmem [#allocation8], %s1209_s4  ;;  %s807_s6 = sshll.u32 %s1088_s12, 6 }
  0x27   : > { %369 = vxpose.xlu0.c.b16.start [1/8] %v791_v0, 128  ;;  %v793_v2 = vld [vmem:[%s1221_s26 + $0x10] sm:$0xff]  ;;  %v794_v3 = vld [vmem:[%s1221_s26 + $0x18] sm:$0xff]  ;;  %v795_v4 = vld [vmem:[%s1221_s26 + $0x20] sm:$0xff]  ;;  %s580_s15 = scalar_lea.hbm %s1294_s2, %s807_s6  ;;  %s581_s16 = sshll.u32 %s1244_s21, 4  ;;  %s582_s16 = int_to_ptr.vmem [resolvable:$true] %s581_s16 }
  0x28   : > { %v796_v5 = vld [vmem:[%s1221_s26 + $0x28] sm:$0xff]  ;;  %v806_v6 = vld [vmem:[%s1213_s5 + $0x38] sm:$0xff]  ;;  %v805_v7 = vld [vmem:[%s1213_s5 + $0x30] sm:$0xff]  ;;  %s583_s18 = sshll.u32 %s580_s15, 4  ;;  %s566_s20 = scalar_lea.sflag [#allocation5], %s1206_s3  ;;  %s584_s18 = int_to_ptr.hbm [resolvable:$true] %s583_s18 }
  0x29   : > { %433 = vmatpush.bf16.xpose.msra.mxu0 %v806_v6  ;;  %855 = vmatpush.bf16.xpose.msra.mxu1 %v806_v6  ;;  %v797_v8 = vld [vmem:[%s1221_s26 + $0x30] sm:$0xff]  ;;  %v804_v9 = vld [vmem:[%s1213_s5 + $0x28] sm:$0xff]  ;;  %v803_v10 = vld [vmem:[%s1213_s5 + $0x20] sm:$0xff]  ;;  %s1024_s28 = sshra.s32 %s584_s18, 4  ;;  %s1030_s30 = scalar_lea.hbm %s1294_s2, 256  ;;  %s1025_s28 = int_to_ptr.hbm [resolvable:$true] %s1024_s28 }
  0x2a   : > { %856 = vmatpush.bf16.xpose.msra.mxu2 %v806_v6  ;;  %857 = vmatpush.bf16.xpose.msra.mxu3 %v806_v6  ;;  %v798_v11 = vld [vmem:[%s1221_s26 + $0x38] sm:$0xff]  ;;  %v801_v13 = vld [vmem:[%s1213_s5 + $0x10] sm:$0xff]  ;;  %v800_v14 = vld [vmem:[%s1213_s5 + $0x8] sm:$0xff]  ;;  %s1026_s19 = scalar_lea.hbm %s1025_s28, 64  ;;  %p1031_p6 = scmp.lt.s32.totalorder %s1025_s28, %s1294_s2 }
  0x2b   : > { %v802_v12 = vld [vmem:[%s1213_s5 + $0x18] sm:$0xff]  ;;  %v799_v15 = vld [vmem:[%s1213_s5] sm:$0xff]  ;;  %p1027_p3 = scmp.ne.s32.totalorder %s1025_s28, %s1026_s19  ;;  %p1032_p7 = scmp.lt.s32.totalorder %s1030_s30, %s1026_s19 }
  0x2d   : > { %p1028_p4 = pnand %p1027_p3, %p1168_p9  ;;  %p1033_p8 = por %p1032_p7, %p1031_p6 }
  0x2f   : > { %p1029_p5 = pneg %p1028_p4 }
  0x31   : > { %434 = vmatpush.bf16.xpose.msra.mxu0 %v805_v7  ;;  %858 = vmatpush.bf16.xpose.msra.mxu1 %v805_v7  ;;  %p1034_p10 = pnand %p1033_p8, %p1029_p5 }
  0x32   : > { %859 = vmatpush.bf16.xpose.msra.mxu2 %v805_v7  ;;  %860 = vmatpush.bf16.xpose.msra.mxu3 %v805_v7 }
  0x37   : > { %370 = vxpose.xlu0.c.b16.cont [2/8] %v792_v1, 128 }
  0x39   : > { %435 = vmatpush.bf16.xpose.msra.mxu0 %v804_v9  ;;  %861 = vmatpush.bf16.xpose.msra.mxu1 %v804_v9 }
  0x3a   : > { %862 = vmatpush.bf16.xpose.msra.mxu2 %v804_v9  ;;  %863 = vmatpush.bf16.xpose.msra.mxu3 %v804_v9 }
  0x41   : > { %436 = vmatpush.bf16.xpose.msra.mxu0 %v803_v10  ;;  %864 = vmatpush.bf16.xpose.msra.mxu1 %v803_v10 }
  0x42   : > { %865 = vmatpush.bf16.xpose.msra.mxu2 %v803_v10  ;;  %866 = vmatpush.bf16.xpose.msra.mxu3 %v803_v10 }
  0x47   : > { %371 = vxpose.xlu0.c.b16.cont [3/8] %v793_v2, 128 }
  0x49   : > { %437 = vmatpush.bf16.xpose.msra.mxu0 %v802_v12  ;;  %867 = vmatpush.bf16.xpose.msra.mxu1 %v802_v12 }
  0x4a   : > { %868 = vmatpush.bf16.xpose.msra.mxu2 %v802_v12  ;;  %869 = vmatpush.bf16.xpose.msra.mxu3 %v802_v12 }
  0x51   : > { %438 = vmatpush.bf16.xpose.msra.mxu0 %v801_v13  ;;  %870 = vmatpush.bf16.xpose.msra.mxu1 %v801_v13 }
  0x52   : > { %871 = vmatpush.bf16.xpose.msra.mxu2 %v801_v13  ;;  %872 = vmatpush.bf16.xpose.msra.mxu3 %v801_v13 }
  0x57   : > { %372 = vxpose.xlu0.c.b16.cont [4/8] %v794_v3, 128 }
  0x59   : > { %439 = vmatpush.bf16.xpose.msra.mxu0 %v800_v14  ;;  %873 = vmatpush.bf16.xpose.msra.mxu1 %v800_v14 }
  0x5a   : > { %874 = vmatpush.bf16.xpose.msra.mxu2 %v800_v14  ;;  %875 = vmatpush.bf16.xpose.msra.mxu3 %v800_v14 }
  0x61   : > { %440 = vmatpush.bf16.xpose.msra.mxu0 %v799_v15  ;;  %876 = vmatpush.bf16.xpose.msra.mxu1 %v799_v15 }
  0x62   : > { %877 = vmatpush.bf16.xpose.msra.mxu2 %v799_v15  ;;  %878 = vmatpush.bf16.xpose.msra.mxu3 %v799_v15 }
  0x67   : > { %373 = vxpose.xlu0.c.b16.cont [5/8] %v795_v4, 128 }
  0x77   : > { %374 = vxpose.xlu0.c.b16.cont [6/8] %v796_v5, 128 }
  0x87   : > { %375 = vxpose.xlu0.c.b16.cont [7/8] %v797_v8, 128 }
  0x97   : > { %376 = vxpose.xlu0.c.b16.end [8/8] %v798_v11, 128 }
  0xd3   : > { %v377_v16 = vpop.trf.xlu0 }
  0xd4   : > { %441 = vmatmul.bf16.vlgmr.msra.gmra.mxu0 %v377_v16 }
  0xe3   : > { %v378_v17 = vpop.trf.xlu0 }
  0xe4   : > { %446 = vmatmul.bf16.gmra.mxu0 %v378_v17 }
  0xf3   : > { %v379_v18 = vpop.trf.xlu0 }
  0xf4   : > { %451 = vmatmul.bf16.vlgmr.msra.gmra.mxu1 %v379_v18 }
 0x103   : > { %v380_v19 = vpop.trf.xlu0 }
 0x104   : > { %456 = vmatmul.bf16.gmra.mxu1 %v380_v19 }
 0x113   : > { %v381_v20 = vpop.trf.xlu0 }
 0x114   : > { %461 = vmatmul.bf16.vlgmr.msra.gmra.mxu2 %v381_v20 }
 0x123   : > { %v382_v21 = vpop.trf.xlu0 }
 0x124   : > { %466 = vmatmul.bf16.gmra.mxu2 %v382_v21 }
 0x133   : > { %v383_v22 = vpop.trf.xlu0 }
 0x134   : > { %471 = vmatmul.bf16.vlgmr.msra.gmra.mxu3 %v383_v22 }
 0x143   : > { %v384_v23 = vpop.trf.xlu0 }
 0x144   : > { %476 = vmatmul.bf16.gmra.mxu3 %v384_v23 }
 0x151   : > { %v442_v24 = vpop.f32.mrf.mxu0 }
 0x159   : > { %v444_v25 = vpop.f32.mrf.mxu0 }
 0x15a   : > { %v811_v26 = vpack.c.bf16 %v444_v25, %v442_v24 }
 0x15c   : > { %812 = vst [vmem:[%s1244_s21] sm:$0xff] %v811_v26  }
 0x161   : > { %v447_v27 = vpop.f32.mrf.mxu0 }
 0x169   : > { %v449_v28 = vpop.f32.mrf.mxu0 }
 0x16a   : > { %v816_v29 = vpack.c.bf16 %v449_v28, %v447_v27 }
 0x16c   : > { %848 = vst [vmem:[%s1244_s21 + $0x8] sm:$0xff] %v816_v29  }
 0x171   : > { %v452_v30 = vpop.f32.mrf.mxu1 }
 0x179   : > { %v454_v31 = vpop.f32.mrf.mxu1 }
 0x17a   : > { %v821_v32 = vpack.c.bf16 %v454_v31, %v452_v30 }
 0x17c   : > { %849 = vst [vmem:[%s1244_s21 + $0x10] sm:$0xff] %v821_v32  }
 0x181   : > { %v457_v33 = vpop.f32.mrf.mxu1 }
 0x189   : > { %v459_v34 = vpop.f32.mrf.mxu1 }
 0x18a   : > { %v826_v35 = vpack.c.bf16 %v459_v34, %v457_v33 }
 0x18c   : > { %850 = vst [vmem:[%s1244_s21 + $0x18] sm:$0xff] %v826_v35  }
 0x197   : > { %v462_v36 = vpop.f32.mrf.mxu2 }
 0x19f   : > { %v464_v37 = vpop.f32.mrf.mxu2 }
 0x1a0   : > { %v831_v38 = vpack.c.bf16 %v464_v37, %v462_v36 }
 0x1a2   : > { %851 = vst [vmem:[%s1244_s21 + $0x20] sm:$0xff] %v831_v38  }
 0x1a7   : > { %v467_v39 = vpop.f32.mrf.mxu2 }
 0x1af   : > { %v469_v40 = vpop.f32.mrf.mxu2 }
 0x1b0   : > { %v836_v41 = vpack.c.bf16 %v469_v40, %v467_v39 }
 0x1b2   : > { %852 = vst [vmem:[%s1244_s21 + $0x28] sm:$0xff] %v836_v41  }
 0x1b7   : > { %v472_v42 = vpop.f32.mrf.mxu3 }
 0x1bf   : > { %v474_v43 = vpop.f32.mrf.mxu3 }
 0x1c0   : > { %v841_v44 = vpack.c.bf16 %v474_v43, %v472_v42 }
 0x1c2   : > { %853 = vst [vmem:[%s1244_s21 + $0x30] sm:$0xff] %v841_v44  }
 0x1c7   : > { %v477_v45 = vpop.f32.mrf.mxu3 }
 0x1cf   : > { %v479_v46 = vpop.f32.mrf.mxu3 }
 0x1d0   : > { %v846_v47 = vpack.c.bf16 %v479_v46, %v477_v45 }
 0x1d2   : > { %854 = vst [vmem:[%s1244_s21 + $0x38] sm:$0xff] %v846_v47  }
 0x1d3   : > { %1037 = shalt.err (!%p1034_p10)
}
 0x1d4   : > { %s1100_s3 = smov 64   ;;  %s1101_s5 = smov 4  }
 0x1d5   : > { %883 = dma.vmem_to_hbm [thread:$0]  (%p1168_p9), %s582_s16, 1024, %s584_s18, %s566_s20, %s1100_s3, %s1100_s3, %s1101_s5  }
 0x1d6 PF: > { %p897_p12 = scmp.ge.s32.totalorder %s1096_s14, 2  ;;  %s598_s25 = sand.u32 1, %s1076_s9  }
 0x1d7   : > { %s599_s26 = scalar_lea.sflag [#allocation5], %s598_s25 }
 0x1d8   : > { %p893_p13 = pnand %p897_p12, %p1175_p11 }
 0x1da   : > { %p894_p0 = pneg %p893_p13 }
 0x1dc   : > { %1071 = dma.done.wait (%p894_p0), %s599_s26, 1024  }
 0x1dd   : > { %1073 = vsyncadd (%p894_p0), %s599_s26, 4294966272  ;;  %s21_s14 = sadd.s32 1, %s1096_s14   ;;  %s1300_s9 = smov %s1080_s10 }
 0x1de   : > { %p18_p1 = scmp.ge.s32.totalorder %s21_s14, 6   ;;  %s1301_s10 = smov %s1084_s11 }
 0x1df   : > { %s1302_s11 = smov %s1173_s23  ;;  %s1303_s12 = smov %s1092_s13 }
 0x1e0   : > { %s1304_s13 = smov %s1306_s17  ;;  %20 = sbr.rel (!%p18_p1) target bundleno = 8 (0x8), region = 94 }
 0x1e5   :  { %605 = vsyncpa [#allocation4], 1 }
 0x1e6   :  { %607 = vsyncpa [#allocation4 + $0x1], 1 }
 0x1e7   :  { %608 = vsyncpa [#allocation7], 1 }
 0x1e8   :  { %610 = vsyncpa [#allocation7 + $0x1], 1 }
 0x1e9   :  { %611 = vsyncpa [#allocation5], 1 }
 0x1ea   :  { %613 = vsyncpa [#allocation5 + $0x1], 1 }

</bundles_post_ra>
